<compile_context>
chip_gen: v7x
topology: tpu7x:2x2x1
jax: 0.10.0
libtpu: 0.0.40
codegen_flags: <defaults>
</compile_context>

<pallas_src>
import math

import numpy as np

import jax
import jax.numpy as jnp
from jax import lax
from jax.experimental import pallas as pl
from jax.experimental.pallas import tpu as pltpu


# ----------------------------- configuration --------------------------------
IMAGE_SIZE = 4                  # 4x4 token grid
NUM_EXTRA_TOKENS = 0
B = 2                           # batch
S = IMAGE_SIZE * IMAGE_SIZE + NUM_EXTRA_TOKENS   # seq_len = 16
E = 32                          # embed_dim
H = 4                           # num_heads
DH = E // H                     # head_embed_dim = 8
BS = B * S                      # fused (batch*seq) rows = 32
SLAB_ROWS = 40                  # 32 weight rows + 1 bias row, padded to x8 sublanes
NEG_INF = -1e30                 # masks cross-batch blocks of the fused scores


def get_slopes(n, start_exponent=1.0):
    """ViTARC slope schedule (geometric), matching the PyTorch module."""
    def geometric(n, start_exponent):
        start = 2.0 ** (-start_exponent)
        ratio = 0.5
        return [start * ratio ** i for i in range(n)]
    if math.log2(n).is_integer():
        return geometric(n, start_exponent)
    closest = 2 ** math.floor(math.log2(n))
    return (geometric(closest, start_exponent)
            + get_slopes(2 * closest, start_exponent)[0::2][: n - closest])


# buffers slopes_l / slopes_r (negated), baked as setup-time constants
SLOPES_L = tuple(-s for s in get_slopes(H, start_exponent=1.0))
SLOPES_R = tuple(-s for s in get_slopes(H, start_exponent=0.5))


# --------------------- setup-time (numpy) precomputation ---------------------
def build_distance_matrix_np():
    """ViTARC distance-matrix buffer (Manhattan grid distances + large_dist edits)."""
    rr = np.arange(IMAGE_SIZE)
    gr, gc = np.meshgrid(rr, rr, indexing="ij")
    pos = np.stack([gr.reshape(-1), gc.reshape(-1)], axis=-1)         # (S, 2)
    grid_2d = np.abs(pos[:, None, :] - pos[None, :, :]).sum(-1).astype(np.float32)
    large_dist = float(IMAGE_SIZE + 100)
    dist = np.full((S, S), large_dist, dtype=np.float32)
    dist[NUM_EXTRA_TOKENS:, NUM_EXTRA_TOKENS:] = grid_2d
    dist[NUM_EXTRA_TOKENS, :] = large_dist
    dist[:, NUM_EXTRA_TOKENS] = large_dist
    return dist


def build_fused_bias_np(dist_np):
    """Two-slope ALiBi bias + cross-batch mask, LANE-DENSE layout (BS, H*BS)."""
    d = dist_np.astype(np.float32)
    lane_blocks = []
    for h in range(H):
        # triu and tril both include the diagonal (matches torch semantics).
        bias_h = np.triu(SLOPES_R[h] * d) + np.tril(SLOPES_L[h] * d)   # (S, S)
        fused_h = np.full((BS, BS), NEG_INF, dtype=np.float32)
        for b in range(B):
            fused_h[b * S:(b + 1) * S, b * S:(b + 1) * S] = bias_h
        lane_blocks.append(fused_h)
    return np.concatenate(lane_blocks, axis=-1)                        # (BS, H*BS)


def pack_param_slab_np(wqkv_t, wproj_t, bproj):
    """Pack [wqkv_t | wproj_t] + proj-bias row into one lane-dense (40, 128) slab."""
    slab = np.zeros((SLAB_ROWS, 4 * E), dtype=np.float32)
    slab[:E, :3 * E] = np.asarray(wqkv_t, dtype=np.float32)            # (E, 3E)
    slab[:E, 3 * E:] = np.asarray(wproj_t, dtype=np.float32)           # (E, E)
    slab[E, :E] = np.asarray(bproj, dtype=np.float32).reshape(E)       # (E,)
    return slab


# ------------------------------- Pallas kernel -------------------------------
def mhsa_kernel(x_ref, slab_ref, bias_ref, o_ref):
    x = x_ref[...]                                   # (BS, E)  both batches stacked
    slab = slab_ref[...]                             # (40, 128) packed params
    bias = bias_ref[...]                             # (BS, H*BS) lane-dense ALiBi+mask

    w_all = slab[0:E, :]                             # (E, 4E) = [wqkv_t | wproj_t]
    wproj = slab[0:E, 3 * E:4 * E]                   # (E, E)
    bproj = slab[E:E + 1, 0:E]                       # (1, E)

    # One full-width (32,32)@(32,128) MXU matmul; lanes 0:96 are qkv, the last
    # 32 lanes (x @ wproj_t) are a free don't-care.
    xw = jnp.dot(x, w_all, preferred_element_type=jnp.float32)          # (BS, 4E)

    contract_last = (((1,), (1,)), ((), ()))                            # q @ k^T
    heads = []
    for h in range(H):                                # static unroll over heads
        qh = xw[:, h * DH:(h + 1) * DH]                                  # (BS, DH)
        kh = xw[:, E + h * DH: E + (h + 1) * DH]                         # (BS, DH)
        vh = xw[:, 2 * E + h * DH: 2 * E + (h + 1) * DH]                 # (BS, DH)

        # Both batch elements in ONE matmul; cross-batch blocks are killed by
        # the NEG_INF entries folded into the precomputed bias.
        scores = lax.dot_general(qh, kh, contract_last,
                                 preferred_element_type=jnp.float32)    # (BS, BS)

        # NOTE: no * scale — mirrors the PyTorch code where `attn_scaled` is
        # computed but never used.  Bias already holds two-slope ALiBi + mask.
        logits = scores + bias[:, h * BS:(h + 1) * BS]

        m = jnp.max(logits, axis=-1, keepdims=True)
        e = jnp.exp(logits - m)
        inv = pl.reciprocal(jnp.sum(e, axis=-1, keepdims=True), approx=False)
        p = e * inv                                                      # softmax

        heads.append(jnp.dot(p, vh, preferred_element_type=jnp.float32))  # (BS, DH)

    # Lane-axis assembly of head outputs (XLU/VPU slots, idle here) -> a single
    # fat (32,32)@(32,32) output-projection matmul instead of 4 K=8 matmuls.
    oh_all = jnp.concatenate(heads, axis=-1)                             # (BS, E)
    y = jnp.dot(oh_all, wproj, preferred_element_type=jnp.float32)       # (BS, E)
    o_ref[...] = y + bproj


def vitarc_mhsa(x, slab, bias):
    """x: (B, S, E); slab: (40, 128) packed params; bias: (BS, H*BS) precomputed."""
    x_flat = x.reshape(BS, E)
    out_flat = pl.pallas_call(
        mhsa_kernel,
        out_shape=jax.ShapeDtypeStruct((BS, E), jnp.float32),
        in_specs=[
            pl.BlockSpec(memory_space=pltpu.MemorySpace.VMEM),
            pl.BlockSpec(memory_space=pltpu.MemorySpace.VMEM),
            pl.BlockSpec(memory_space=pltpu.MemorySpace.VMEM),
        ],
        out_specs=pl.BlockSpec(memory_space=pltpu.MemorySpace.VMEM),
    )(x_flat, slab, bias)
    return out_flat.reshape(B, S, E)


# --------------------------- pure-JAX reference ------------------------------
def reference(x, wqkv_t, wproj_t, bproj, dist):
    qkv = x @ wqkv_t                                                # (B, S, 3E)
    qkv = qkv.reshape(B, S, 3, H, DH).transpose(2, 0, 3, 1, 4)      # (3,B,H,S,DH)
    q, k, v = qkv[0], qkv[1], qkv[2]
    attn = jnp.einsum("bhsd,bhtd->bhst", q, k)                      # (B,H,S,S)
    sl = jnp.asarray(SLOPES_L, jnp.float32)[:, None, None]
    sr = jnp.asarray(SLOPES_R, jnp.float32)[:, None, None]
    rel = jnp.broadcast_to(dist, (H, S, S))
    bias = jnp.triu(sr * rel) + jnp.tril(sl * rel)                  # (H,S,S)
    logits = attn + bias[None]
    p = jax.nn.softmax(logits, axis=-1)
    out = jnp.einsum("bhst,bhtd->bhsd", p, v)
    out = out.transpose(0, 2, 1, 3).reshape(B, S, E)
    return out @ wproj_t + bproj


# ---------------------------------- main -------------------------------------
if __name__ == "__main__":
    key = jax.random.PRNGKey(0)
    kx, kqkv, kproj, kbias = jax.random.split(key, 4)

    # input
    x = jax.random.normal(kx, (B, S, E), dtype=jnp.float32)

    # deterministic parameter init (PyTorch Linear weight is (out, in); we use
    # the transpose so the kernel does x @ W_t).
    w_qkv = jax.random.normal(kqkv, (3 * E, E), dtype=jnp.float32) * 0.05
    w_proj = jax.random.normal(kproj, (E, E), dtype=jnp.float32) * 0.05
    b_proj = jax.random.normal(kbias, (E,), dtype=jnp.float32) * 0.05
    wqkv_t = w_qkv.T                         # (E, 3E)
    wproj_t = w_proj.T                       # (E, E)

    # One-time setup (numpy — never re-executed on the hot path):
    dist_np = build_distance_matrix_np()
    bias = jnp.asarray(build_fused_bias_np(dist_np))                 # (BS, H*BS)
    slab = jnp.asarray(pack_param_slab_np(np.asarray(wqkv_t),
                                          np.asarray(wproj_t),
                                          np.asarray(b_proj)))       # (40, 128)

    out = vitarc_mhsa(x, slab, bias)
    out = jax.block_until_ready(out)

    ref = reference(x, wqkv_t, wproj_t, b_proj.reshape(1, E), jnp.asarray(dist_np))
    assert out.shape == (B, S, E)
    assert jnp.allclose(out, ref, atol=1e-4, rtol=1e-4), (
        float(jnp.max(jnp.abs(out - ref))))

    print("KERNEL_OK")
</pallas_src>

<mosaic_0001>
module attributes {stable_mosaic.version = 11 : i64} {
  func.func @mhsa_kernel(%arg0: memref<32x32xf32, #tpu.memory_space<vmem>>, %arg1: memref<40x128xf32, #tpu.memory_space<vmem>>, %arg2: memref<32x128xf32, #tpu.memory_space<vmem>>, %arg3: memref<32x32xf32, #tpu.memory_space<vmem>>) attributes {dimension_semantics = [], scalar_prefetch = 0 : i64, scratch_operands = 0 : i64, tpu.core_type = #tpu.core_type<tc>} {
    %c0 = arith.constant 0 : index
    %c0_0 = arith.constant 0 : index
    %0 = vector.load %arg0[%c0, %c0_0] : memref<32x32xf32, #tpu.memory_space<vmem>>, vector<32x32xf32>
    %c0_1 = arith.constant 0 : index
    %c0_2 = arith.constant 0 : index
    %1 = vector.load %arg1[%c0_1, %c0_2] : memref<40x128xf32, #tpu.memory_space<vmem>>, vector<40x128xf32>
    %c0_3 = arith.constant 0 : index
    %c0_4 = arith.constant 0 : index
    %2 = vector.load %arg2[%c0_3, %c0_4] : memref<32x128xf32, #tpu.memory_space<vmem>>, vector<32x128xf32>
    %3 = vector.extract_strided_slice %1 {offsets = [0, 0], sizes = [32, 128], strides = [1, 1]} : vector<40x128xf32> to vector<32x128xf32>
    %4 = vector.extract_strided_slice %1 {offsets = [0, 96], sizes = [32, 32], strides = [1, 1]} : vector<40x128xf32> to vector<32x32xf32>
    %5 = vector.extract_strided_slice %1 {offsets = [32, 0], sizes = [1, 32], strides = [1, 1]} : vector<40x128xf32> to vector<1x32xf32>
    %cst = arith.constant dense<0.000000e+00> : vector<32x128xf32>
    %6 = tpu.matmul %0, %3, %cst {dimension_numbers = #tpu.dot_dimension_numbers<[1], [0], [0], [1], [0, 0, 1, 1], [], []>} : vector<32x32xf32>, vector<32x128xf32>, vector<32x128xf32> -> vector<32x128xf32>
    %7 = vector.extract_strided_slice %6 {offsets = [0, 0], sizes = [32, 8], strides = [1, 1]} : vector<32x128xf32> to vector<32x8xf32>
    %8 = vector.extract_strided_slice %6 {offsets = [0, 32], sizes = [32, 8], strides = [1, 1]} : vector<32x128xf32> to vector<32x8xf32>
    %9 = vector.extract_strided_slice %6 {offsets = [0, 64], sizes = [32, 8], strides = [1, 1]} : vector<32x128xf32> to vector<32x8xf32>
    %cst_5 = arith.constant dense<0.000000e+00> : vector<32x32xf32>
    %10 = tpu.matmul %7, %8, %cst_5 {dimension_numbers = #tpu.dot_dimension_numbers<[1], [1], [0], [0], [0, 0, 1, 0], [], []>} : vector<32x8xf32>, vector<32x8xf32>, vector<32x32xf32> -> vector<32x32xf32>
    %11 = vector.extract_strided_slice %2 {offsets = [0, 0], sizes = [32, 32], strides = [1, 1]} : vector<32x128xf32> to vector<32x32xf32>
    %12 = arith.addf %10, %11 : vector<32x32xf32>
    %cst_6 = arith.constant dense<0xFF800000> : vector<32xf32>
    %13 = vector.multi_reduction <maximumf>, %12, %cst_6 [1] : vector<32x32xf32> to vector<32xf32>
    %14 = vector.shape_cast %13 : vector<32xf32> to vector<32x1xf32>
    %15 = vector.broadcast %14 : vector<32x1xf32> to vector<32x32xf32>
    %16 = arith.subf %12, %15 : vector<32x32xf32>
    %17 = math.exp %16 : vector<32x32xf32>
    %cst_7 = arith.constant dense<0.000000e+00> : vector<32xf32>
    %18 = vector.multi_reduction <add>, %17, %cst_7 [1] : vector<32x32xf32> to vector<32xf32>
    %19 = vector.shape_cast %18 : vector<32xf32> to vector<32x1xf32>
    %20 = tpu.reciprocal %19 : vector<32x1xf32> -> vector<32x1xf32>
    %21 = vector.broadcast %20 : vector<32x1xf32> to vector<32x32xf32>
    %22 = arith.mulf %17, %21 : vector<32x32xf32>
    %cst_8 = arith.constant dense<0.000000e+00> : vector<32x8xf32>
    %23 = tpu.matmul %22, %9, %cst_8 {dimension_numbers = #tpu.dot_dimension_numbers<[1], [0], [0], [1], [0, 0, 1, 1], [], []>} : vector<32x32xf32>, vector<32x8xf32>, vector<32x8xf32> -> vector<32x8xf32>
    %24 = vector.extract_strided_slice %6 {offsets = [0, 8], sizes = [32, 8], strides = [1, 1]} : vector<32x128xf32> to vector<32x8xf32>
    %25 = vector.extract_strided_slice %6 {offsets = [0, 40], sizes = [32, 8], strides = [1, 1]} : vector<32x128xf32> to vector<32x8xf32>
    %26 = vector.extract_strided_slice %6 {offsets = [0, 72], sizes = [32, 8], strides = [1, 1]} : vector<32x128xf32> to vector<32x8xf32>
    %cst_9 = arith.constant dense<0.000000e+00> : vector<32x32xf32>
    %27 = tpu.matmul %24, %25, %cst_9 {dimension_numbers = #tpu.dot_dimension_numbers<[1], [1], [0], [0], [0, 0, 1, 0], [], []>} : vector<32x8xf32>, vector<32x8xf32>, vector<32x32xf32> -> vector<32x32xf32>
    %28 = vector.extract_strided_slice %2 {offsets = [0, 32], sizes = [32, 32], strides = [1, 1]} : vector<32x128xf32> to vector<32x32xf32>
    %29 = arith.addf %27, %28 : vector<32x32xf32>
    %cst_10 = arith.constant dense<0xFF800000> : vector<32xf32>
    %30 = vector.multi_reduction <maximumf>, %29, %cst_10 [1] : vector<32x32xf32> to vector<32xf32>
    %31 = vector.shape_cast %30 : vector<32xf32> to vector<32x1xf32>
    %32 = vector.broadcast %31 : vector<32x1xf32> to vector<32x32xf32>
    %33 = arith.subf %29, %32 : vector<32x32xf32>
    %34 = math.exp %33 : vector<32x32xf32>
    %cst_11 = arith.constant dense<0.000000e+00> : vector<32xf32>
    %35 = vector.multi_reduction <add>, %34, %cst_11 [1] : vector<32x32xf32> to vector<32xf32>
    %36 = vector.shape_cast %35 : vector<32xf32> to vector<32x1xf32>
    %37 = tpu.reciprocal %36 : vector<32x1xf32> -> vector<32x1xf32>
    %38 = vector.broadcast %37 : vector<32x1xf32> to vector<32x32xf32>
    %39 = arith.mulf %34, %38 : vector<32x32xf32>
    %cst_12 = arith.constant dense<0.000000e+00> : vector<32x8xf32>
    %40 = tpu.matmul %39, %26, %cst_12 {dimension_numbers = #tpu.dot_dimension_numbers<[1], [0], [0], [1], [0, 0, 1, 1], [], []>} : vector<32x32xf32>, vector<32x8xf32>, vector<32x8xf32> -> vector<32x8xf32>
    %41 = vector.extract_strided_slice %6 {offsets = [0, 16], sizes = [32, 8], strides = [1, 1]} : vector<32x128xf32> to vector<32x8xf32>
    %42 = vector.extract_strided_slice %6 {offsets = [0, 48], sizes = [32, 8], strides = [1, 1]} : vector<32x128xf32> to vector<32x8xf32>
    %43 = vector.extract_strided_slice %6 {offsets = [0, 80], sizes = [32, 8], strides = [1, 1]} : vector<32x128xf32> to vector<32x8xf32>
    %cst_13 = arith.constant dense<0.000000e+00> : vector<32x32xf32>
    %44 = tpu.matmul %41, %42, %cst_13 {dimension_numbers = #tpu.dot_dimension_numbers<[1], [1], [0], [0], [0, 0, 1, 0], [], []>} : vector<32x8xf32>, vector<32x8xf32>, vector<32x32xf32> -> vector<32x32xf32>
    %45 = vector.extract_strided_slice %2 {offsets = [0, 64], sizes = [32, 32], strides = [1, 1]} : vector<32x128xf32> to vector<32x32xf32>
    %46 = arith.addf %44, %45 : vector<32x32xf32>
    %cst_14 = arith.constant dense<0xFF800000> : vector<32xf32>
    %47 = vector.multi_reduction <maximumf>, %46, %cst_14 [1] : vector<32x32xf32> to vector<32xf32>
    %48 = vector.shape_cast %47 : vector<32xf32> to vector<32x1xf32>
    %49 = vector.broadcast %48 : vector<32x1xf32> to vector<32x32xf32>
    %50 = arith.subf %46, %49 : vector<32x32xf32>
    %51 = math.exp %50 : vector<32x32xf32>
    %cst_15 = arith.constant dense<0.000000e+00> : vector<32xf32>
    %52 = vector.multi_reduction <add>, %51, %cst_15 [1] : vector<32x32xf32> to vector<32xf32>
    %53 = vector.shape_cast %52 : vector<32xf32> to vector<32x1xf32>
    %54 = tpu.reciprocal %53 : vector<32x1xf32> -> vector<32x1xf32>
    %55 = vector.broadcast %54 : vector<32x1xf32> to vector<32x32xf32>
    %56 = arith.mulf %51, %55 : vector<32x32xf32>
    %cst_16 = arith.constant dense<0.000000e+00> : vector<32x8xf32>
    %57 = tpu.matmul %56, %43, %cst_16 {dimension_numbers = #tpu.dot_dimension_numbers<[1], [0], [0], [1], [0, 0, 1, 1], [], []>} : vector<32x32xf32>, vector<32x8xf32>, vector<32x8xf32> -> vector<32x8xf32>
    %58 = vector.extract_strided_slice %6 {offsets = [0, 24], sizes = [32, 8], strides = [1, 1]} : vector<32x128xf32> to vector<32x8xf32>
    %59 = vector.extract_strided_slice %6 {offsets = [0, 56], sizes = [32, 8], strides = [1, 1]} : vector<32x128xf32> to vector<32x8xf32>
    %60 = vector.extract_strided_slice %6 {offsets = [0, 88], sizes = [32, 8], strides = [1, 1]} : vector<32x128xf32> to vector<32x8xf32>
    %cst_17 = arith.constant dense<0.000000e+00> : vector<32x32xf32>
    %61 = tpu.matmul %58, %59, %cst_17 {dimension_numbers = #tpu.dot_dimension_numbers<[1], [1], [0], [0], [0, 0, 1, 0], [], []>} : vector<32x8xf32>, vector<32x8xf32>, vector<32x32xf32> -> vector<32x32xf32>
    %62 = vector.extract_strided_slice %2 {offsets = [0, 96], sizes = [32, 32], strides = [1, 1]} : vector<32x128xf32> to vector<32x32xf32>
    %63 = arith.addf %61, %62 : vector<32x32xf32>
    %cst_18 = arith.constant dense<0xFF800000> : vector<32xf32>
    %64 = vector.multi_reduction <maximumf>, %63, %cst_18 [1] : vector<32x32xf32> to vector<32xf32>
    %65 = vector.shape_cast %64 : vector<32xf32> to vector<32x1xf32>
    %66 = vector.broadcast %65 : vector<32x1xf32> to vector<32x32xf32>
    %67 = arith.subf %63, %66 : vector<32x32xf32>
    %68 = math.exp %67 : vector<32x32xf32>
    %cst_19 = arith.constant dense<0.000000e+00> : vector<32xf32>
    %69 = vector.multi_reduction <add>, %68, %cst_19 [1] : vector<32x32xf32> to vector<32xf32>
    %70 = vector.shape_cast %69 : vector<32xf32> to vector<32x1xf32>
    %71 = tpu.reciprocal %70 : vector<32x1xf32> -> vector<32x1xf32>
    %72 = vector.broadcast %71 : vector<32x1xf32> to vector<32x32xf32>
    %73 = arith.mulf %68, %72 : vector<32x32xf32>
    %cst_20 = arith.constant dense<0.000000e+00> : vector<32x8xf32>
    %74 = tpu.matmul %73, %60, %cst_20 {dimension_numbers = #tpu.dot_dimension_numbers<[1], [0], [0], [1], [0, 0, 1, 1], [], []>} : vector<32x32xf32>, vector<32x8xf32>, vector<32x8xf32> -> vector<32x8xf32>
    %75 = tpu.concatenate %23, %40, %57, %74 in 1 : vector<32x8xf32>, vector<32x8xf32>, vector<32x8xf32>, vector<32x8xf32> -> vector<32x32xf32>
    %cst_21 = arith.constant dense<0.000000e+00> : vector<32x32xf32>
    %76 = tpu.matmul %75, %4, %cst_21 {dimension_numbers = #tpu.dot_dimension_numbers<[1], [0], [0], [1], [0, 0, 1, 1], [], []>} : vector<32x32xf32>, vector<32x32xf32>, vector<32x32xf32> -> vector<32x32xf32>
    %77 = vector.broadcast %5 : vector<1x32xf32> to vector<32x32xf32>
    %78 = arith.addf %76, %77 : vector<32x32xf32>
    %c0_22 = arith.constant 0 : index
    %c0_23 = arith.constant 0 : index
    %79 = vector.load %arg3[%c0_22, %c0_23] : memref<32x32xf32, #tpu.memory_space<vmem>>, vector<32x32xf32>
    tpu.vector_store %arg3[%c0_22, %c0_23], %78 {strides = array<i32>} : memref<32x32xf32, #tpu.memory_space<vmem>>, vector<32x32xf32>,
    return
  }
}

</mosaic_0001>

<bundles_post_ra>
// kernel: tpu_custom_call.1
= control target key start
LH: loop header
LB: loop body
LE: loop exit
PB: predicated region body
PF: predicated region fallthrough
CT: control target
= control target key end

     0   :  { %8 = vsyncpa [#allocation3], 0  ;;  %s2499_s0 = inlined_call_operand.hbm [shape: f32[32,32], index: 0, kind: input, shape index: {}]   ;;  %s2500_s1 = inlined_call_operand.hbm [shape: f32[40,128], index: 1, kind: input, shape index: {}]   ;;  %s2501_s2 = inlined_call_operand.hbm [shape: f32[32,128], index: 2, kind: input, shape index: {}]   ;;  %s2502_s3 = inlined_call_operand.hbm [shape: f32[32,32], index: 3, kind: output, shape index: {}]  }
   0x1   :  { %9 = vsyncpa [#allocation6], 0 }
   0x2   :  { %10 = vsyncpa [#allocation4], 0  ;;  %s2125_s12 = smov [#allocation5]   ;;  %s2126_s14 = smov [#allocation2]  }
   0x3   :  { %s28_s13 = sshll.u32 %s2125_s12, 4  ;;  %s16_s15 = sshll.u32 %s2126_s14, 4  ;;  %s29_s13 = int_to_ptr.vmem [resolvable:$true] %s28_s13  ;;  %s2165_s15 = int_to_ptr.vmem [resolvable:$true] %s16_s15 }
   0x4   :  { %s2031_s18 = scalar_lea.hbm %s2500_s1, 640 }
   0x5   :  { %p2032_p0 = scmp.ne.s32.totalorder %s2500_s1, %s2031_s18  ;;  %p2035_p1 = scmp.lt.u32.totalorder %s2031_s18, %s2500_s1 }
   0x7   :  { %p2037_p2 = pnand %p2035_p1, %p2032_p0 }
   0x9   :  { %2040 = shalt.err (!%p2037_p2)
}
   0xa   :  { %s2041_s23 = scalar_lea.vmem %s29_s13, 640  ;;  %p2046_p4 = scmp.lt.s32.totalorder %s29_s13, %s29_s13 }
   0xb   :  { %p2042_p3 = scmp.ne.s32.totalorder %s29_s13, %s2041_s23  ;;  %p2047_p5 = scmp.lt.s32.totalorder %s2041_s23, %s2041_s23 }
   0xd   :  { %p2048_p6 = por %p2047_p5, %p2046_p4 }
   0xf   :  { %p2049_p7 = pnand %p2048_p6, %p2042_p3 }
  0x11   :  { %2052 = shalt.err (!%p2049_p7)
}
  0x12   :  { %s2127_s24 = smov 128   ;;  %s2128_s25 = smov 8  }
  0x13   :  { %34 = dma.hbm_to_vmem [thread:$0]  %s2500_s1, 640, %s29_s13, [#allocation6], %s2127_s24, %s2127_s24, %s2128_s25  }
  0x14   :  { %s2053_s30 = scalar_lea.hbm %s2499_s0, 512 }
  0x15   :  { %p2054_p8 = scmp.ne.s32.totalorder %s2499_s0, %s2053_s30  ;;  %p2057_p9 = scmp.lt.u32.totalorder %s2053_s30, %s2499_s0 }
  0x17   :  { %p2059_p10 = pnand %p2057_p9, %p2054_p8 }
  0x19   :  { %2062 = shalt.err (!%p2059_p10)
}
  0x1a   :  { %s2063_s8 = scalar_lea.vmem %s2165_s15, 512  ;;  %p2068_p12 = scmp.lt.s32.totalorder %s2165_s15, %s2165_s15 }
  0x1b   :  { %p2064_p11 = scmp.ne.s32.totalorder %s2165_s15, %s2063_s8  ;;  %p2069_p13 = scmp.lt.s32.totalorder %s2063_s8, %s2063_s8 }
  0x1d   :  { %p2070_p0 = por %p2069_p13, %p2068_p12 }
  0x1f   :  { %p2071_p1 = pnand %p2070_p0, %p2064_p11 }
  0x21   :  { %2074 = shalt.err (!%p2071_p1)
}
  0x22   :  { %22 = dma.hbm_to_vmem [thread:$0]  %s2499_s0, 512, %s2165_s15, [#allocation3], %s2127_s24, %s2127_s24, %s2128_s25  }
  0x23   :  { %s2129_s10 = smov [#allocation7]   ;;  %s2075_s14 = scalar_lea.hbm %s2501_s2, 512 }
  0x24   :  { %s40_s11 = sshll.u32 %s2129_s10, 4  ;;  %p2076_p2 = scmp.ne.s32.totalorder %s2501_s2, %s2075_s14  ;;  %s41_s11 = int_to_ptr.vmem [resolvable:$true] %s40_s11 }
  0x25   :  { %p2079_p3 = scmp.lt.u32.totalorder %s2075_s14, %s2501_s2 }
  0x27   :  { %p2081_p4 = pnand %p2079_p3, %p2076_p2 }
  0x29   :  { %2084 = shalt.err (!%p2081_p4)
}
  0x2a   :  { %s2085_s20 = scalar_lea.vmem %s41_s11, 512  ;;  %p2090_p6 = scmp.lt.s32.totalorder %s41_s11, %s41_s11 }
  0x2b   :  { %p2086_p5 = scmp.ne.s32.totalorder %s41_s11, %s2085_s20  ;;  %p2091_p7 = scmp.lt.s32.totalorder %s2085_s20, %s2085_s20 }
  0x2d   :  { %p2092_p8 = por %p2091_p7, %p2090_p6 }
  0x2f   :  { %p2093_p9 = pnand %p2092_p8, %p2086_p5 }
  0x31   :  { %2096 = shalt.err (!%p2093_p9)
}
  0x32   :  { %46 = dma.hbm_to_vmem [thread:$0]  %s2501_s2, 512, %s41_s11, [#allocation6], %s2127_s24, %s2127_s24, %s2128_s25  }
  0x33   :  { %2119 = dma.done.wait [#allocation3], 512  }
  0x34   :  { %2120 = vsyncadd [#allocation3], 4294966784 }
  0x35   :  { %2121 = dma.done.wait [#allocation6], 1152  }
  0x36   :  { %2122 = vsyncadd [#allocation6], 4294966144  ;;  %vm69_vm0 = vcmask 261120   ;;  %v2217_v0 = vld [vmem:[#allocation5] sm:$0xff]  ;;  %v2219_v1 = vld [vmem:[#allocation5 + $0x8] sm:$0xff]  ;;  %vm179_vm1 = vcmask 64512  }
  0x37   :  { %v2221_v2 = vld [vmem:[#allocation5 + $0x10] sm:$0xff]  ;;  %v1957_v3 = vpack.i.bf16 %v2219_v1, %v2217_v0  ;;  %v1761_v4 = vpack.c.bf16 %v2219_v1, %v2217_v0  ;;  %v2227_v5 = vld [vmem:[#allocation5 + $0x18] sm:$0xff]  ;;  %v56_v6 = vld [vmem:[#allocation2] sm:$0xff]  ;;  %s2130_s2 = smov 96   ;;  %s2131_s21 = smov 64   ;;  %vm1336_vm3 = vcmask 130048  }
  0x38   :  { %v1765_v7 = vpack.c.bf16 %v2227_v5, %v2221_v2  ;;  %1629 = vmatprep.mubr.msk.f32.mxu0 %vm69_vm0, %v56_v6  ;;  %v57_v8 = vld [vmem:[#allocation2 + $0x8] sm:$0xff]  ;;  %v58_v9 = vld [vmem:[#allocation2 + $0x10] sm:$0xff]  ;;  %v59_v10 = vld [vmem:[#allocation2 + $0x18] sm:$0xff]  ;;  %s2132_s22 = smov 88   ;;  %s2133_s23 = smov 120   ;;  %vm1341_vm4 = vcmask 195584  }
  0x39   :  { %1762 = vmatprep.subr.bf16.mxu0 %v1761_v4  ;;  %vm2259_vm2 = vmpackc.low %vm179_vm1, %vm179_vm1  ;;  %v2277_v26 = vld [vmem:[#allocation7] sm:$0xff]  ;;  %v2279_v28 = vld [vmem:[#allocation7 + $0x8] sm:$0xff]  ;;  %s2134_s26 = smov 56   ;;  %s2135_s27 = smov 80  }
  0x3a   :  { %1764 = vmatpush3.bf16.msra.mxu0 %v1761_v4  ;;  %v2282_v31 = vld [vmem:[#allocation7 + $0x10] sm:$0xff]  ;;  %v2286_v35 = vld [vmem:[#allocation7 + $0x18] sm:$0xff]  ;;  %s2136_s28 = smov 112   ;;  %s2137_s29 = smov 48  }
  0x3b   :  { %1766 = vmatprep.subr.bf16.mxu0 %v1765_v7  ;;  %s2138_s30 = smov 72   ;;  %s2139_s4 = smov 104  }
  0x3c   :  { %s2140_s5 = smov 32   ;;  %s2141_s6 = smov 40  }
  0x3d   :  { %s2142_s7 = smov 16   ;;  %s2143_s8 = smov 24  }
  0x3e   :  { %1768 = vmatpush3.bf16.msra.mxu0 %v1765_v7  ;;  %s2144_s1 = smov [#allocation8]  }
  0x3f   :  { %s1472_s9 = sshll.u32 %s2144_s1, 4  ;;  %s1473_s9 = int_to_ptr.vmem [resolvable:$true] %s1472_s9 }
  0x40   :  { %s2097_s10 = scalar_lea.vmem %s1473_s9, 512  ;;  %p2102_p11 = scmp.lt.s32.totalorder %s1473_s9, %s1473_s9 }
  0x41   :  { %1630 = vmatmul.mubr.msk.f32.vlgmr.msra.gmra.mrb[0].mxu0 %vm69_vm0, %v57_v8  ;;  %p2098_p10 = scmp.ne.s32.totalorder %s1473_s9, %s2097_s10  ;;  %p2103_p12 = scmp.lt.s32.totalorder %s2097_s10, %s2097_s10 }
  0x42   :  { %1632 = vmatprep.mubr.msk.f32.mxu0 %vm69_vm0, %v58_v9 }
  0x43   :  { %p2104_p13 = por %p2103_p12, %p2102_p11 }
  0x45   :  { %1633 = vmatmul.mubr.msk.f32.gmra.mrb[2].mxu0 %vm69_vm0, %v59_v10  ;;  %p2105_p0 = pnand %p2104_p13, %p2098_p10 }
 0x114   :  { %v2235_v11 = vpop.f32.mrb[0].mxu0 }
 0x115   :  { %v2237_v12 = vpop.f32.mrb[1].mxu0 }
 0x116   :  { %1643 = vmatprep.mubr.msk.f32.mxu1 %vm179_vm1, %v2237_v12  ;;  %v2243_v13 = vpack.i.bf16 %v2235_v11, %v2237_v12 }
 0x118   :  { %1878 = vrot.lane.b32.xlu0 %v2243_v13, %s2130_s2  ;;  %v2247_v14 = vpop.f32.mrb[2].mxu0 }
 0x119   :  { %v2249_v15 = vpop.f32.mrb[3].mxu0 }
 0x11a   :  { %v2253_v16 = vpack.i.bf16 %v2247_v14, %v2249_v15 }
 0x11c   :  { %1883 = vrot.lane.b32.xlu0 %v2253_v16, %s2130_s2 }
 0x18a   :  { %v1879_v17 = vpop.permute.xlu0 %1878 }
 0x18b   :  { %v1881_v18 = vunpack.i.h.bf16 %v1879_v17  ;;  %v1880_v19 = vunpack.i.l.bf16 %v1879_v17 }
 0x18d   :  { %v1769_v21 = vpack.c.bf16 %v1881_v18, %v1880_v19 }
 0x18e   :  { %v1884_v22 = vpop.permute.xlu0 %1883 }
 0x18f   :  { %1771 = vmatprep.subr.msk.bf16.mxu1 %vm2259_vm2, %v1769_v21  ;;  %v1886_v23 = vunpack.i.h.bf16 %v1884_v22  ;;  %v1885_v24 = vunpack.i.l.bf16 %v1884_v22 }
 0x190   :  { %1774 = vmatpush3.bf16.xpose.msk.msra.mxu1 %vm2259_vm2, %v1769_v21 }
 0x191   :  { %v1775_v25 = vpack.c.bf16 %v1886_v23, %v1885_v24 }
 0x193   :  { %1777 = vmatprep.subr.msk.bf16.mxu1 %vm2259_vm2, %v1775_v25 }
 0x198   :  { %1780 = vmatpush3.bf16.xpose.msk.msra.mxu1 %vm2259_vm2, %v1775_v25 }
 0x19f   :  { %1644 = vmatmul.mubr.msk.f32.vlgmr.msra.gmra.mrb[0].mxu1 %vm179_vm1, %v2235_v11 }
 0x1a0   :  { %1646 = vmatprep.mubr.msk.f32.mxu1 %vm179_vm1, %v2249_v15 }
 0x1a3   :  { %1647 = vmatmul.mubr.msk.f32.gmra.mrb[2].mxu1 %vm179_vm1, %v2247_v14 }
 0x272   :  { %v1645_v27 = vpop.f32.mrb[0].mxu1 }
 0x273   :  { %v262_v29 = vpop.f32.mrb[1].mxu1  ;;  %v268_v32 = vadd.f32 %v1645_v27, %v2279_v28 }
 0x274   :  { %v263_v30 = vadd.f32 %v262_v29, %v2277_v26 }
 0x275   :  { %v284_v40 = vsel %vm69_vm0, %v268_v32, -inf }
 0x276   :  { %v1648_v33 = vpop.f32.mrb[2].mxu1  ;;  %v281_v34 = vsel %vm69_vm0, %v263_v30, -inf }
 0x277   :  { %v272_v36 = vpop.f32.mrb[3].mxu1  ;;  %282 = vmax.xlane.f32.xlu1 %v281_v34  ;;  %v278_v38 = vadd.f32 %v1648_v33, %v2286_v35 }
 0x278   :  { %v273_v37 = vadd.f32 %v272_v36, %v2282_v31 }
 0x279   :  { %v290_v41 = vsel %vm69_vm0, %v278_v38, -inf }
 0x27a   :  { %v287_v39 = vsel %vm69_vm0, %v273_v37, -inf }
 0x27b   :  { %288 = vmax.xlane.f32.xlu0 %v287_v39  ;;  %285 = vmax.xlane.f32.xlu1 %v284_v40 }
 0x27f   :  { %291 = vmax.xlane.f32.xlu1 %v290_v41 }
 0x290   :  { %1888 = vrot.lane.b32.xlu1 %v2243_v13, %s2131_s21 }
 0x291   :  { %1893 = vrot.lane.b32.xlu0 %v2253_v16, %s2131_s21 }
 0x294   :  { %1898 = vrot.lane.b32.xlu1 %v2243_v13, %s2132_s22 }
 0x295   :  { %438 = vrot.lane.b32.xlu0 %v2249_v15, %s2133_s23 }
 0x298   :  { %1903 = vrot.lane.b32.xlu1 %v2253_v16, %s2132_s22 }
 0x299   :  { %454 = vrot.lane.b32.xlu0 %v2277_v26, %s2130_s2 }
 0x29c   :  { %434 = vrot.lane.b32.xlu1 %v2237_v12, %s2133_s23 }
 0x29d   :  { %458 = vrot.lane.b32.xlu0 %v2282_v31, %s2130_s2 }
 0x304   :  { %v283_v42 = vpop.xlane.xlu1 %282 }
 0x305   :  { %v293_v43 = vsub.f32 %v263_v30, %v283_v42 }
 0x307   :  { %v297_v48 = vmul.f32 1.442695, %v293_v43 }
 0x308   :  { %v289_v44 = vpop.xlane.xlu0 %288  ;;  %v286_v45 = vpop.xlane.xlu1 %285 }
 0x309   :  { %v294_v46 = vsub.f32 %v268_v32, %v286_v45  ;;  %v295_v52 = vsub.f32 %v273_v37, %v289_v44 }
 0x30b   :  { %v299_v47 = vmul.f32 1.442695, %v294_v46  ;;  %v301_v60 = vmul.f32 1.442695, %v295_v52 }
 0x30c   :  { %v292_v49 = vpop.xlane.xlu1 %291  ;;  %v1894_v51 = vpop.permute.xlu0 %1893 }
 0x30d   :  { %v296_v50 = vsub.f32 %v278_v38, %v292_v49  ;;  %1967 = vpow2.f32 %v299_v47  ;;  %v1896_v55 = vunpack.i.h.bf16 %v1894_v51  ;;  %v1895_v56 = vunpack.i.l.bf16 %v1894_v51 }
 0x30e   :  { %1969 = vpow2.f32 %v297_v48 }
 0x30f   :  { %v303_v53 = vmul.f32 1.442695, %v296_v50  ;;  %v1785_v62 = vpack.c.bf16 %v1896_v55, %v1895_v56 }
 0x310   :  { %v1889_v54 = vpop.permute.xlu1 %1888  ;;  %v439_v44 = vpop.permute.xlu0 %438 }
 0x311   :  { %v1891_v57 = vunpack.i.h.bf16 %v1889_v54  ;;  %v1890_v58 = vunpack.i.l.bf16 %v1889_v54  ;;  %1971 = vpow2.f32 %v303_v53 }
 0x312   :  { %1973 = vpow2.f32 %v301_v60 }
 0x313   :  { %v1781_v59 = vpack.c.bf16 %v1891_v57, %v1890_v58 }
 0x314   :  { %v1899_v61 = vpop.permute.xlu1 %1898  ;;  %v455_v50 = vpop.permute.xlu0 %454 }
 0x315   :  { %v1901_v63 = vunpack.i.h.bf16 %v1899_v61  ;;  %v1900_v4 = vunpack.i.l.bf16 %v1899_v61  ;;  %1782 = vmatprep.subr.bf16.mxu0 %v1781_v59 }
 0x316   :  { %1784 = vmatpush3.bf16.msra.mxu0 %v1781_v59 }
 0x317   :  { %1786 = vmatprep.subr.bf16.mxu0 %v1785_v62  ;;  %v1968_v6 = vpop.eup %1967  ;;  %v1789_v7 = vpack.c.bf16 %v1901_v63, %v1900_v4 }
 0x318   :  { %v308_v8 = vsel %vm69_vm0, %v1968_v6, 0.0  ;;  %v1970_v9 = vpop.eup %1969  ;;  %v1904_v22 = vpop.permute.xlu1 %1903 }
 0x319   :  { %309 = vadd.xlane.f32.xlu1 %v308_v8  ;;  %v305_v10 = vsel %vm69_vm0, %v1970_v9, 0.0  ;;  %v1906_v33 = vunpack.i.h.bf16 %v1904_v22  ;;  %v1905_v34 = vunpack.i.l.bf16 %v1904_v22  ;;  %v459_v57 = vpop.permute.xlu0 %458 }
 0x31a   :  { %1788 = vmatpush3.bf16.msra.mxu0 %v1785_v62 }
 0x31b   :  { %1791 = vmatprep.subr.msk.bf16.mxu0 %vm2259_vm2, %v1789_v7  ;;  %v1972_v17 = vpop.eup %1971  ;;  %v1795_v38 = vpack.c.bf16 %v1906_v33, %v1905_v34 }
 0x31c   :  { %v314_v18 = vsel %vm69_vm0, %v1972_v17, 0.0  ;;  %v1974_v19 = vpop.eup %1973  ;;  %v435_v23 = vpop.permute.xlu1 %434 }
 0x31d   :  { %306 = vadd.xlane.f32.xlu1 %v305_v10  ;;  %v311_v21 = vsel %vm69_vm0, %v1974_v19, 0.0 }
 0x321   :  { %315 = vadd.xlane.f32.xlu1 %v314_v18 }
 0x325   :  { %312 = vadd.xlane.f32.xlu1 %v311_v21 }
 0x336   :  { %436 = vrot.lane.b32.xlu1 %v2235_v11, %s2133_s23 }
 0x33a   :  { %440 = vrot.lane.b32.xlu1 %v2247_v14, %s2133_s23 }
 0x33e   :  { %456 = vrot.lane.b32.xlu1 %v2279_v28, %s2130_s2 }
 0x342   :  { %460 = vrot.lane.b32.xlu1 %v2286_v35, %s2130_s2 }
 0x3a6   :  { %v310_v24 = vpop.xlane.xlu1 %309 }
 0x3a7   :  { %1975 = vrcp.f32 %v310_v24 }
 0x3aa   :  { %v307_v25 = vpop.xlane.xlu1 %306 }
 0x3ab   :  { %1977 = vrcp.f32 %v307_v25 }
 0x3ae   :  { %v316_v27 = vpop.xlane.xlu1 %315 }
 0x3af   :  { %1979 = vrcp.f32 %v316_v27 }
 0x3b1   :  { %v1976_v30 = vpop.eup %1975 }
 0x3b2   :  { %v313_v29 = vpop.xlane.xlu1 %312  ;;  %v322_v37 = vmul.f32 %v1976_v30, %v1968_v6 }
 0x3b3   :  { %1981 = vrcp.f32 %v313_v29 }
 0x3b5   :  { %v1978_v32 = vpop.eup %1977 }
 0x3b6   :  { %v321_v36 = vmul.f32 %v1978_v32, %v1970_v9  ;;  %v437_v43 = vpop.permute.xlu1 %436 }
 0x3b8   :  { %1657 = vmatprep.mubr.msk.f32.mxu0 %vm69_vm0, %v321_v36 }
 0x3b9   :  { %1658 = vmatmul.mubr.msk.f32.vlgmr.msra.gmra.mrb[4].mxu0 %vm69_vm0, %v322_v37  ;;  %v1980_v39 = vpop.eup %1979 }
 0x3ba   :  { %1794 = vmatpush3.bf16.xpose.msk.msra.mxu0 %vm2259_vm2, %v1789_v7  ;;  %v324_v42 = vmul.f32 %v1980_v39, %v1972_v17  ;;  %v441_v45 = vpop.permute.xlu1 %440 }
 0x3bb   :  { %1797 = vmatprep.subr.msk.bf16.mxu0 %vm2259_vm2, %v1795_v38 }
 0x3bd   :  { %v1982_v40 = vpop.eup %1981 }
 0x3be   :  { %v323_v41 = vmul.f32 %v1982_v40, %v1974_v19  ;;  %v457_v51 = vpop.permute.xlu1 %456 }
 0x3c0   :  { %1660 = vmatprep.mubr.msk.f32.mxu0 %vm69_vm0, %v323_v41 }
 0x3c1   :  { %1661 = vmatmul.mubr.msk.f32.gmra.mrb[6].mxu0 %vm69_vm0, %v324_v42 }
 0x3c2   :  { %1800 = vmatpush3.bf16.xpose.msk.msra.mxu0 %vm2259_vm2, %v1795_v38  ;;  %1671 = vmatprep.mubr.msk.f32.mxu0 %vm179_vm1, %v435_v23  ;;  %v461_v60 = vpop.permute.xlu1 %460 }
 0x3c9   :  { %1672 = vmatmul.mubr.msk.f32.vlgmr.msra.gmra.mrb[8].mxu0 %vm179_vm1, %v437_v43 }
 0x3ca   :  { %1674 = vmatprep.mubr.msk.f32.mxu0 %vm179_vm1, %v439_v44 }
 0x3cd   :  { %1675 = vmatmul.mubr.msk.f32.gmra.mrb[10].mxu0 %vm179_vm1, %v441_v45 }
 0x48c   :  { %v2335_v46 = vpop.f32.mrb[4].mxu0 }
 0x48d   :  { %v2337_v47 = vpop.f32.mrb[5].mxu0 }
 0x494   :  { %v2339_v48 = vpop.f32.mrb[6].mxu0 }
 0x495   :  { %v2341_v49 = vpop.f32.mrb[7].mxu0 }
 0x49c   :  { %v1673_v52 = vpop.f32.mrb[8].mxu0 }
 0x49d   :  { %v554_v53 = vadd.f32 %v1673_v52, %v457_v51  ;;  %v548_v54 = vpop.f32.mrb[9].mxu0 }
 0x49e   :  { %v549_v55 = vadd.f32 %v548_v54, %v455_v50 }
 0x49f   :  { %v570_v56 = vsel %vm69_vm0, %v554_v53, -inf }
 0x4a0   :  { %571 = vmax.xlane.f32.xlu1 %v570_v56  ;;  %v1676_v58 = vpop.f32.mrb[10].mxu0  ;;  %v567_v59 = vsel %vm69_vm0, %v549_v55, -inf }
 0x4a1   :  { %v558_v61 = vpop.f32.mrb[11].mxu0  ;;  %568 = vmax.xlane.f32.xlu0 %v567_v59  ;;  %v564_v63 = vadd.f32 %v1676_v58, %v461_v60 }
 0x4a2   :  { %v559_v62 = vadd.f32 %v558_v61, %v459_v57 }
 0x4a3   :  { %v576_v6 = vsel %vm69_vm0, %v564_v63, -inf }
 0x4a4   :  { %v573_v4 = vsel %vm69_vm0, %v559_v62, -inf }
 0x4a5   :  { %574 = vmax.xlane.f32.xlu0 %v573_v4 }
 0x4a9   :  { %577 = vmax.xlane.f32.xlu0 %v576_v6 }
 0x4b1   :  { %1908 = vrot.lane.b32.xlu1 %v2243_v13, %s2134_s26 }
 0x4b5   :  { %1918 = vrot.lane.b32.xlu1 %v2243_v13, %s2135_s27 }
 0x52d   :  { %v572_v7 = vpop.xlane.xlu1 %571 }
 0x52e   :  { %v580_v8 = vsub.f32 %v554_v53, %v572_v7  ;;  %v569_v9 = vpop.xlane.xlu0 %568 }
 0x52f   :  { %v579_v10 = vsub.f32 %v549_v55, %v569_v9 }
 0x530   :  { %v585_v17 = vmul.f32 1.442695, %v580_v8 }
 0x531   :  { %v583_v18 = vmul.f32 1.442695, %v579_v10  ;;  %v1909_v19 = vpop.permute.xlu1 %1908 }
 0x532   :  { %1983 = vpow2.f32 %v585_v17  ;;  %v1911_v21 = vunpack.i.h.bf16 %v1909_v19  ;;  %v1910_v22 = vunpack.i.l.bf16 %v1909_v19  ;;  %v575_v30 = vpop.xlane.xlu0 %574 }
 0x533   :  { %1985 = vpow2.f32 %v583_v18  ;;  %v581_v34 = vsub.f32 %v559_v62, %v575_v30 }
 0x534   :  { %v1801_v23 = vpack.c.bf16 %v1911_v21, %v1910_v22 }
 0x535   :  { %v587_v37 = vmul.f32 1.442695, %v581_v34  ;;  %v1919_v42 = vpop.permute.xlu1 %1918 }
 0x536   :  { %1802 = vmatprep.subr.bf16.mxu1 %v1801_v23  ;;  %v578_v32 = vpop.xlane.xlu0 %577  ;;  %v1921_v50 = vunpack.i.h.bf16 %v1919_v42  ;;  %v1920_v51 = vunpack.i.l.bf16 %v1919_v42 }
 0x537   :  { %1804 = vmatpush3.bf16.msra.mxu1 %v1801_v23  ;;  %v582_v33 = vsub.f32 %v564_v63, %v578_v32 }
 0x538   :  { %v1809_v55 = vpack.c.bf16 %v1921_v50, %v1920_v51 }
 0x539   :  { %v589_v36 = vmul.f32 1.442695, %v582_v33 }
 0x53b   :  { %1987 = vpow2.f32 %v589_v36 }
 0x53c   :  { %v1984_v24 = vpop.eup %1983  ;;  %1989 = vpow2.f32 %v587_v37 }
 0x53d   :  { %v1986_v25 = vpop.eup %1985  ;;  %v594_v27 = vsel %vm69_vm0, %v1984_v24, 0.0 }
 0x53e   :  { %595 = vadd.xlane.f32.xlu0 %v594_v27  ;;  %v591_v29 = vsel %vm69_vm0, %v1986_v25, 0.0 }
 0x53f   :  { %592 = vadd.xlane.f32.xlu1 %v591_v29 }
 0x545   :  { %v1988_v38 = vpop.eup %1987 }
 0x546   :  { %v1990_v39 = vpop.eup %1989  ;;  %v600_v40 = vsel %vm69_vm0, %v1988_v38, 0.0 }
 0x547   :  { %v597_v41 = vsel %vm69_vm0, %v1990_v39, 0.0 }
 0x550   :  { %1923 = vrot.lane.b32.xlu1 %v2253_v16, %s2135_s27 }
 0x554   :  { %1913 = vrot.lane.b32.xlu0 %v2253_v16, %s2134_s26 }
 0x573   :  { %601 = vadd.xlane.f32.xlu0 %v600_v40 }
 0x574   :  { %598 = vadd.xlane.f32.xlu1 %v597_v41 }
 0x585   :  { %722 = vrot.lane.b32.xlu1 %v2235_v11, %s2136_s28 }
 0x589   :  { %726 = vrot.lane.b32.xlu1 %v2247_v14, %s2136_s28  ;;  %720 = vrot.lane.b32.xlu0 %v2237_v12, %s2136_s28 }
 0x58d   :  { %724 = vrot.lane.b32.xlu0 %v2249_v15, %s2136_s28  ;;  %738 = vrot.lane.b32.xlu1 %v2279_v28, %s2131_s21 }
 0x591   :  { %736 = vrot.lane.b32.xlu0 %v2277_v26, %s2131_s21  ;;  %742 = vrot.lane.b32.xlu1 %v2286_v35, %s2131_s21 }
 0x595   :  { %740 = vrot.lane.b32.xlu0 %v2282_v31, %s2131_s21 }
 0x5cb   :  { %v596_v43 = vpop.xlane.xlu0 %595 }
 0x5cc   :  { %1991 = vrcp.f32 %v596_v43  ;;  %v593_v44 = vpop.xlane.xlu1 %592 }
 0x5cd   :  { %1993 = vrcp.f32 %v593_v44 }
 0x5cf   :  { %v1914_v45 = vpop.permute.xlu0 %1913 }
 0x5d0   :  { %v1916_v52 = vunpack.i.h.bf16 %v1914_v45  ;;  %v1915_v53 = vunpack.i.l.bf16 %v1914_v45  ;;  %v1924_v57 = vpop.permute.xlu1 %1923 }
 0x5d1   :  { %v1926_v61 = vunpack.i.h.bf16 %v1924_v57  ;;  %v1925_v62 = vunpack.i.l.bf16 %v1924_v57 }
 0x5d2   :  { %v1805_v54 = vpack.c.bf16 %v1916_v52, %v1915_v53 }
 0x5d3   :  { %v1815_v63 = vpack.c.bf16 %v1926_v61, %v1925_v62 }
 0x5d4   :  { %1806 = vmatprep.subr.bf16.mxu1 %v1805_v54 }
 0x5d5   :  { %1808 = vmatpush3.bf16.msra.mxu1 %v1805_v54 }
 0x5d6   :  { %v1992_v56 = vpop.eup %1991  ;;  %1811 = vmatprep.subr.msk.bf16.mxu1 %vm2259_vm2, %v1809_v55 }
 0x5d7   :  { %v1994_v58 = vpop.eup %1993  ;;  %v608_v60 = vmul.f32 %v1992_v56, %v1984_v24 }
 0x5d8   :  { %v607_v59 = vmul.f32 %v1994_v58, %v1986_v25 }
 0x5da   :  { %1685 = vmatprep.mubr.msk.f32.mxu1 %vm69_vm0, %v607_v59 }
 0x5db   :  { %1686 = vmatmul.mubr.msk.f32.vlgmr.msra.gmra.mrb[4].mxu1 %vm69_vm0, %v608_v60 }
 0x5de   :  { %1814 = vmatpush3.bf16.xpose.msk.msra.mxu1 %vm2259_vm2, %v1809_v55 }
 0x5df   :  { %1817 = vmatprep.subr.msk.bf16.mxu1 %vm2259_vm2, %v1815_v63 }
 0x5e6   :  { %1820 = vmatpush3.bf16.xpose.msk.msra.mxu1 %vm2259_vm2, %v1815_v63 }
 0x600   :  { %v602_v4 = vpop.xlane.xlu0 %601 }
 0x601   :  { %1995 = vrcp.f32 %v602_v4  ;;  %v599_v6 = vpop.xlane.xlu1 %598 }
 0x602   :  { %1997 = vrcp.f32 %v599_v6 }
 0x604   :  { %v721_v10 = vpop.permute.xlu0 %720 }
 0x605   :  { %v723_v18 = vpop.permute.xlu1 %722 }
 0x608   :  { %v725_v19 = vpop.permute.xlu0 %724 }
 0x609   :  { %v727_v21 = vpop.permute.xlu1 %726 }
 0x60b   :  { %v1996_v7 = vpop.eup %1995 }
 0x60c   :  { %v1998_v8 = vpop.eup %1997  ;;  %v610_v17 = vmul.f32 %v1996_v7, %v1988_v38  ;;  %v737_v27 = vpop.permute.xlu0 %736 }
 0x60d   :  { %v609_v9 = vmul.f32 %v1998_v8, %v1990_v39  ;;  %v739_v29 = vpop.permute.xlu1 %738 }
 0x60f   :  { %1688 = vmatprep.mubr.msk.f32.mxu1 %vm69_vm0, %v609_v9 }
 0x610   :  { %1689 = vmatmul.mubr.msk.f32.gmra.mrb[6].mxu1 %vm69_vm0, %v610_v17  ;;  %v741_v37 = vpop.permute.xlu0 %740 }
 0x611   :  { %1699 = vmatprep.mubr.msk.f32.mxu1 %vm179_vm1, %v721_v10  ;;  %v743_v40 = vpop.permute.xlu1 %742 }
 0x614   :  { %1700 = vmatmul.mubr.msk.f32.vlgmr.msra.gmra.mrb[8].mxu1 %vm179_vm1, %v723_v18 }
 0x615   :  { %1702 = vmatprep.mubr.msk.f32.mxu1 %vm179_vm1, %v725_v19 }
 0x618   :  { %1703 = vmatmul.mubr.msk.f32.gmra.mrb[10].mxu1 %vm179_vm1, %v727_v21 }
 0x6ae   :  { %v2383_v22 = vpop.f32.mrb[4].mxu1 }
 0x6af   :  { %v2385_v23 = vpop.f32.mrb[5].mxu1 }
 0x6e3   :  { %v2387_v24 = vpop.f32.mrb[6].mxu1 }
 0x6e4   :  { %v2389_v25 = vpop.f32.mrb[7].mxu1 }
 0x6e7   :  { %v1701_v30 = vpop.f32.mrb[8].mxu1 }
 0x6e8   :  { %v836_v32 = vadd.f32 %v1701_v30, %v739_v29  ;;  %v830_v33 = vpop.f32.mrb[9].mxu1 }
 0x6e9   :  { %v831_v34 = vadd.f32 %v830_v33, %v737_v27 }
 0x6ea   :  { %v852_v36 = vsel %vm69_vm0, %v836_v32, -inf }
 0x6eb   :  { %853 = vmax.xlane.f32.xlu1 %v852_v36  ;;  %v1704_v38 = vpop.f32.mrb[10].mxu1  ;;  %v849_v39 = vsel %vm69_vm0, %v831_v34, -inf }
 0x6ec   :  { %v840_v41 = vpop.f32.mrb[11].mxu1  ;;  %850 = vmax.xlane.f32.xlu0 %v849_v39  ;;  %v846_v43 = vadd.f32 %v1704_v38, %v743_v40 }
 0x6ed   :  { %v841_v42 = vadd.f32 %v840_v41, %v741_v37 }
 0x6ee   :  { %v858_v45 = vsel %vm69_vm0, %v846_v43, -inf }
 0x6ef   :  { %v855_v44 = vsel %vm69_vm0, %v841_v42, -inf }
 0x6f0   :  { %856 = vmax.xlane.f32.xlu0 %v855_v44 }
 0x6f4   :  { %859 = vmax.xlane.f32.xlu0 %v858_v45 }
 0x6fc   :  { %1928 = vrot.lane.b32.xlu1 %v2243_v13, %s2137_s29 }
 0x700   :  { %1938 = vrot.lane.b32.xlu1 %v2243_v13, %s2138_s30 }
 0x704   :  { %1943 = vrot.lane.b32.xlu1 %v2253_v16, %s2138_s30 }
 0x778   :  { %v854_v50 = vpop.xlane.xlu1 %853 }
 0x779   :  { %v862_v51 = vsub.f32 %v836_v32, %v854_v50  ;;  %v851_v52 = vpop.xlane.xlu0 %850 }
 0x77a   :  { %v861_v53 = vsub.f32 %v831_v34, %v851_v52 }
 0x77b   :  { %v867_v54 = vmul.f32 1.442695, %v862_v51 }
 0x77c   :  { %v865_v55 = vmul.f32 1.442695, %v861_v53  ;;  %v1929_v56 = vpop.permute.xlu1 %1928 }
 0x77d   :  { %1999 = vpow2.f32 %v867_v54  ;;  %v1931_v57 = vunpack.i.h.bf16 %v1929_v56  ;;  %v1930_v58 = vunpack.i.l.bf16 %v1929_v56  ;;  %v857_v4 = vpop.xlane.xlu0 %856 }
 0x77e   :  { %2001 = vpow2.f32 %v865_v55  ;;  %v863_v8 = vsub.f32 %v841_v42, %v857_v4 }
 0x77f   :  { %v1821_v59 = vpack.c.bf16 %v1931_v57, %v1930_v58 }
 0x780   :  { %v869_v10 = vmul.f32 1.442695, %v863_v8 }
 0x781   :  { %1822 = vmatprep.subr.bf16.mxu0 %v1821_v59  ;;  %v860_v6 = vpop.xlane.xlu0 %859 }
 0x782   :  { %1824 = vmatpush3.bf16.msra.mxu0 %v1821_v59  ;;  %v864_v7 = vsub.f32 %v846_v43, %v860_v6 }
 0x784   :  { %v871_v9 = vmul.f32 1.442695, %v864_v7 }
 0x786   :  { %2003 = vpow2.f32 %v871_v9 }
 0x787   :  { %v2000_v60 = vpop.eup %1999  ;;  %2005 = vpow2.f32 %v869_v10 }
 0x788   :  { %v2002_v61 = vpop.eup %2001  ;;  %v876_v62 = vsel %vm69_vm0, %v2000_v60, 0.0 }
 0x789   :  { %877 = vadd.xlane.f32.xlu0 %v876_v62  ;;  %v873_v63 = vsel %vm69_vm0, %v2002_v61, 0.0 }
 0x78a   :  { %874 = vadd.xlane.f32.xlu1 %v873_v63 }
 0x790   :  { %v2004_v17 = vpop.eup %2003 }
 0x791   :  { %v2006_v18 = vpop.eup %2005  ;;  %v882_v19 = vsel %vm69_vm0, %v2004_v17, 0.0 }
 0x792   :  { %v879_v21 = vsel %vm69_vm0, %v2006_v18, 0.0 }
 0x79b   :  { %1004 = vrot.lane.b32.xlu1 %v2235_v11, %s2139_s4  ;;  %v1939_v11 = vpop.permute.xlu1 %1938 }
 0x79c   :  { %v1941_v29 = vunpack.i.h.bf16 %v1939_v11  ;;  %v1940_v30 = vunpack.i.l.bf16 %v1939_v11 }
 0x79e   :  { %v1829_v34 = vpack.c.bf16 %v1941_v29, %v1940_v30 }
 0x79f   :  { %1933 = vrot.lane.b32.xlu0 %v2253_v16, %s2137_s29  ;;  %v1944_v27 = vpop.permute.xlu1 %1943 }
 0x7a0   :  { %v1946_v36 = vunpack.i.h.bf16 %v1944_v27  ;;  %v1945_v37 = vunpack.i.l.bf16 %v1944_v27 }
 0x7a2   :  { %v1835_v39 = vpack.c.bf16 %v1946_v36, %v1945_v37 }
 0x7be   :  { %883 = vadd.xlane.f32.xlu0 %v882_v19 }
 0x7bf   :  { %880 = vadd.xlane.f32.xlu1 %v879_v21 }
 0x7d0   :  { %1008 = vrot.lane.b32.xlu1 %v2247_v14, %s2139_s4 }
 0x7d4   :  { %1002 = vrot.lane.b32.xlu0 %v2237_v12, %s2139_s4  ;;  %1020 = vrot.lane.b32.xlu1 %v2279_v28, %s2140_s5 }
 0x7d8   :  { %1006 = vrot.lane.b32.xlu0 %v2249_v15, %s2139_s4  ;;  %1024 = vrot.lane.b32.xlu1 %v2286_v35, %s2140_s5 }
 0x7dc   :  { %1018 = vrot.lane.b32.xlu0 %v2277_v26, %s2140_s5 }
 0x7e0   :  { %1022 = vrot.lane.b32.xlu0 %v2282_v31, %s2140_s5 }
 0x816   :  { %v878_v14 = vpop.xlane.xlu0 %877 }
 0x817   :  { %2007 = vrcp.f32 %v878_v14  ;;  %v875_v12 = vpop.xlane.xlu1 %874 }
 0x818   :  { %2009 = vrcp.f32 %v875_v12 }
 0x81a   :  { %v1934_v15 = vpop.permute.xlu0 %1933 }
 0x81b   :  { %v1936_v32 = vunpack.i.h.bf16 %v1934_v15  ;;  %v1935_v28 = vunpack.i.l.bf16 %v1934_v15  ;;  %v1005_v40 = vpop.permute.xlu1 %1004 }
 0x81d   :  { %v1825_v33 = vpack.c.bf16 %v1936_v32, %v1935_v28 }
 0x81f   :  { %1826 = vmatprep.subr.bf16.mxu0 %v1825_v33 }
 0x820   :  { %1828 = vmatpush3.bf16.msra.mxu0 %v1825_v33 }
 0x821   :  { %v2008_v26 = vpop.eup %2007  ;;  %1831 = vmatprep.subr.msk.bf16.mxu0 %vm2259_vm2, %v1829_v34 }
 0x822   :  { %v2010_v31 = vpop.eup %2009  ;;  %v890_v38 = vmul.f32 %v2008_v26, %v2000_v60 }
 0x823   :  { %v889_v35 = vmul.f32 %v2010_v31, %v2002_v61 }
 0x825   :  { %1713 = vmatprep.mubr.msk.f32.mxu0 %vm69_vm0, %v889_v35 }
 0x826   :  { %1714 = vmatmul.mubr.msk.f32.vlgmr.msra.gmra.mrb[12].mxu0 %vm69_vm0, %v890_v38 }
 0x829   :  { %1834 = vmatpush3.bf16.xpose.msk.msra.mxu0 %vm2259_vm2, %v1829_v34 }
 0x82a   :  { %1837 = vmatprep.subr.msk.bf16.mxu0 %vm2259_vm2, %v1835_v39 }
 0x831   :  { %1840 = vmatpush3.bf16.xpose.msk.msra.mxu0 %vm2259_vm2, %v1835_v39 }
 0x84b   :  { %v884_v41 = vpop.xlane.xlu0 %883 }
 0x84c   :  { %2011 = vrcp.f32 %v884_v41  ;;  %v881_v42 = vpop.xlane.xlu1 %880  ;;  %v1962_v41 = vpack.i.bf16 %v2227_v5, %v2221_v2 }
 0x84d   :  { %2013 = vrcp.f32 %v881_v42 }
 0x84f   :  { %v1003_v50 = vpop.permute.xlu0 %1002 }
 0x850   :  { %v1009_v20 = vpop.permute.xlu1 %1008 }
 0x853   :  { %v1007_v52 = vpop.permute.xlu0 %1006 }
 0x854   :  { %v1021_v58 = vpop.permute.xlu1 %1020 }
 0x856   :  { %v2012_v43 = vpop.eup %2011 }
 0x857   :  { %v2014_v44 = vpop.eup %2013  ;;  %v892_v51 = vmul.f32 %v2012_v43, %v2004_v17  ;;  %v1019_v57 = vpop.permute.xlu0 %1018 }
 0x858   :  { %v891_v45 = vmul.f32 %v2014_v44, %v2006_v18  ;;  %v1025_v8 = vpop.permute.xlu1 %1024 }
 0x85a   :  { %1716 = vmatprep.mubr.msk.f32.mxu0 %vm69_vm0, %v891_v45 }
 0x85b   :  { %1717 = vmatmul.mubr.msk.f32.gmra.mrb[14].mxu0 %vm69_vm0, %v892_v51  ;;  %v1023_v4 = vpop.permute.xlu0 %1022 }
 0x85c   :  { %1727 = vmatprep.mubr.msk.f32.mxu0 %vm179_vm1, %v1003_v50 }
 0x85f   :  { %1728 = vmatmul.mubr.msk.f32.vlgmr.msra.gmra.mrb[16].mxu0 %vm179_vm1, %v1005_v40 }
 0x860   :  { %1730 = vmatprep.mubr.msk.f32.mxu0 %vm179_vm1, %v1007_v52 }
 0x863   :  { %1731 = vmatmul.mubr.msk.f32.gmra.mrb[18].mxu0 %vm179_vm1, %v1009_v20 }
 0x8f9   :  { %v1715_v53 = vpop.f32.mrb[12].mxu0 }
 0x8fa   :  { %v983_v54 = vpop.f32.mrb[13].mxu0 }
 0x92e   :  { %v1718_v55 = vpop.f32.mrb[14].mxu0 }
 0x92f   :  { %v993_v56 = vpop.f32.mrb[15].mxu0 }
 0x932   :  { %v1729_v59 = vpop.f32.mrb[16].mxu0 }
 0x933   :  { %v1118_v60 = vadd.f32 %v1729_v59, %v1021_v58  ;;  %v1112_v61 = vpop.f32.mrb[17].mxu0 }
 0x934   :  { %v1113_v62 = vadd.f32 %v1112_v61, %v1019_v57 }
 0x935   :  { %v1134_v63 = vsel %vm69_vm0, %v1118_v60, -inf }
 0x936   :  { %1135 = vmax.xlane.f32.xlu1 %v1134_v63  ;;  %v1732_v6 = vpop.f32.mrb[18].mxu0  ;;  %v1131_v7 = vsel %vm69_vm0, %v1113_v62, -inf }
 0x937   :  { %v1122_v9 = vpop.f32.mrb[19].mxu0  ;;  %1132 = vmax.xlane.f32.xlu0 %v1131_v7  ;;  %v1128_v17 = vadd.f32 %v1732_v6, %v1025_v8 }
 0x938   :  { %v1123_v10 = vadd.f32 %v1122_v9, %v1023_v4 }
 0x939   :  { %v1140_v19 = vsel %vm69_vm0, %v1128_v17, -inf }
 0x93a   :  { %v1137_v18 = vsel %vm69_vm0, %v1123_v10, -inf }
 0x93b   :  { %1138 = vmax.xlane.f32.xlu0 %v1137_v18 }
 0x93f   :  { %1141 = vmax.xlane.f32.xlu0 %v1140_v19 }
 0x9c3   :  { %v1136_v21 = vpop.xlane.xlu1 %1135 }
 0x9c4   :  { %v1144_v11 = vsub.f32 %v1118_v60, %v1136_v21  ;;  %v1133_v27 = vpop.xlane.xlu0 %1132 }
 0x9c5   :  { %v1143_v14 = vsub.f32 %v1113_v62, %v1133_v27 }
 0x9c6   :  { %v1149_v12 = vmul.f32 1.442695, %v1144_v11 }
 0x9c7   :  { %v1147_v15 = vmul.f32 1.442695, %v1143_v14 }
 0x9c8   :  { %2015 = vpow2.f32 %v1149_v12  ;;  %v1139_v29 = vpop.xlane.xlu0 %1138 }
 0x9c9   :  { %2017 = vpow2.f32 %v1147_v15  ;;  %v1145_v30 = vsub.f32 %v1123_v10, %v1139_v29 }
 0x9cb   :  { %v1151_v32 = vmul.f32 1.442695, %v1145_v30 }
 0x9cc   :  { %v1142_v28 = vpop.xlane.xlu0 %1141 }
 0x9cd   :  { %2019 = vpow2.f32 %v1151_v32  ;;  %v1146_v33 = vsub.f32 %v1128_v17, %v1142_v28 }
 0x9cf   :  { %v1153_v34 = vmul.f32 1.442695, %v1146_v33 }
 0x9d1   :  { %2021 = vpow2.f32 %v1153_v34 }
 0x9d2   :  { %v2016_v26 = vpop.eup %2015 }
 0x9d3   :  { %v2018_v31 = vpop.eup %2017  ;;  %v1158_v35 = vsel %vm69_vm0, %v2016_v26, 0.0 }
 0x9d4   :  { %1159 = vadd.xlane.f32.xlu0 %v1158_v35  ;;  %v1155_v36 = vsel %vm69_vm0, %v2018_v31, 0.0 }
 0x9d5   :  { %1156 = vadd.xlane.f32.xlu1 %v1155_v36 }
 0x9d7   :  { %v2020_v37 = vpop.eup %2019 }
 0x9d8   :  { %v1161_v38 = vsel %vm69_vm0, %v2020_v37, 0.0 }
 0x9d9   :  { %1162 = vadd.xlane.f32.xlu1 %v1161_v38  ;;  %v64_v38 = vld [vmem:[#allocation5 + $0x20] sm:$0xff] }
 0x9db   :  { %v2022_v39 = vpop.eup %2021 }
 0x9dc   :  { %v1164_v40 = vsel %vm69_vm0, %v2022_v39, 0.0 }
 0x9dd   :  { %1165 = vadd.xlane.f32.xlu0 %v1164_v40 }
 0x9ea   :  { %1948 = vrot.lane.b32.xlu1 %v2243_v13, %s2141_s6 }
 0x9ee   :  { %1958 = vrot.lane.b32.xlu1 %v1957_v3, %s2140_s5 }
 0x9f2   :  { %1963 = vrot.lane.b32.xlu1 %v1962_v41, %s2140_s5 }
 0x9f3   :  { %1953 = vrot.lane.b32.xlu0 %v2253_v16, %s2141_s6 }
 0x9f6   :  { %1290 = vrot.lane.b32.xlu1 %v2383_v22, %s2128_s25 }
 0x9f7   :  { %1288 = vrot.lane.b32.xlu0 %v2385_v23, %s2128_s25 }
 0x9fa   :  { %1306 = vrot.lane.b32.xlu1 %v1715_v53, %s2142_s7 }
 0x9fb   :  { %1304 = vrot.lane.b32.xlu0 %v983_v54, %s2142_s7 }
 0x9fe   :  { %1294 = vrot.lane.b32.xlu1 %v2387_v24, %s2128_s25 }
 0x9ff   :  { %1292 = vrot.lane.b32.xlu0 %v2389_v25, %s2128_s25 }
 0xa02   :  { %1310 = vrot.lane.b32.xlu1 %v1718_v55, %s2142_s7 }
 0xa03   :  { %1308 = vrot.lane.b32.xlu0 %v993_v56, %s2142_s7 }
 0xa61   :  { %v1160_v1 = vpop.xlane.xlu0 %1159 }
 0xa62   :  { %v1157_v0 = vpop.xlane.xlu1 %1156 }
 0xa63   :  { %2023 = vrcp.f32 %v1157_v0 }
 0xa64   :  { %2025 = vrcp.f32 %v1160_v1 }
 0xa66   :  { %v1163_v2 = vpop.xlane.xlu1 %1162 }
 0xa67   :  { %2027 = vrcp.f32 %v1163_v2 }
 0xa6a   :  { %v1949_v3 = vpop.permute.xlu1 %1948  ;;  %v1166_v5 = vpop.xlane.xlu0 %1165 }
 0xa6b   :  { %v1951_v13 = vunpack.i.h.bf16 %v1949_v3  ;;  %v1950_v16 = vunpack.i.l.bf16 %v1949_v3  ;;  %2029 = vrcp.f32 %v1166_v5 }
 0xa6d   :  { %v2024_v22 = vpop.eup %2023  ;;  %v1841_v23 = vpack.c.bf16 %v1951_v13, %v1950_v16 }
 0xa6e   :  { %v1959_v42 = vpop.permute.xlu1 %1958  ;;  %v1954_v24 = vpop.permute.xlu0 %1953  ;;  %v1171_v43 = vmul.f32 %v2024_v22, %v2018_v31 }
 0xa6f   :  { %v1961_v44 = vunpack.i.h.bf16 %v1959_v42  ;;  %v1960_v25 = vunpack.i.l.bf16 %v1959_v42  ;;  %v1956_v45 = vunpack.i.h.bf16 %v1954_v24  ;;  %v1955_v50 = vunpack.i.l.bf16 %v1954_v24  ;;  %1842 = vmatprep.subr.bf16.mxu1 %v1841_v23  ;;  %v2026_v20 = vpop.eup %2025 }
 0xa70   :  { %1844 = vmatpush3.bf16.msra.mxu1 %v1841_v23  ;;  %1741 = vmatprep.mubr.msk.f32.mxu1 %vm69_vm0, %v1171_v43  ;;  %v1172_v57 = vmul.f32 %v2026_v20, %v2016_v26 }
 0xa71   :  { %v1849_v51 = vpack.c.bf16 %v1961_v44, %v1960_v25  ;;  %v1845_v52 = vpack.c.bf16 %v1956_v45, %v1955_v50  ;;  %v2028_v54 = vpop.eup %2027 }
 0xa72   :  { %v1964_v53 = vpop.permute.xlu1 %1963  ;;  %v1173_v60 = vmul.f32 %v2028_v54, %v2020_v37  ;;  %v1289_v8 = vpop.permute.xlu0 %1288 }
 0xa73   :  { %v1966_v55 = vunpack.i.h.bf16 %v1964_v53  ;;  %v1965_v56 = vunpack.i.l.bf16 %v1964_v53  ;;  %1846 = vmatprep.subr.bf16.mxu1 %v1845_v52  ;;  %v1332_v11 = vsel %vm179_vm1, %v2337_v47, %v1289_v8 }
 0xa74   :  { %1848 = vmatpush3.bf16.msra.mxu1 %v1845_v52 }
 0xa75   :  { %v1853_v58 = vpack.c.bf16 %v1966_v55, %v1965_v56  ;;  %1850 = vmatprep.subr.bf16.mxu1 %v1849_v51  ;;  %v2030_v59 = vpop.eup %2029 }
 0xa76   :  { %v1174_v61 = vmul.f32 %v2030_v59, %v2022_v39  ;;  %v1291_v7 = vpop.permute.xlu1 %1290  ;;  %v1305_v10 = vpop.permute.xlu0 %1304 }
 0xa77   :  { %1742 = vmatmul.mubr.msk.f32.vlgmr.msra.gmra.mrb[12].mxu1 %vm69_vm0, %v1172_v57  ;;  %v1333_v14 = vsel %vm179_vm1, %v2335_v46, %v1291_v7  ;;  %v1337_v12 = vsel %vm1336_vm3, %v1332_v11, %v1305_v10 }
 0xa78   :  { %1744 = vmatprep.mubr.msk.f32.mxu1 %vm69_vm0, %v1173_v60  ;;  %1852 = vmatpush3.bf16.msra.mxu1 %v1849_v51 }
 0xa79   :  { %1854 = vmatprep.subr.bf16.mxu1 %v1853_v58 }
 0xa7a   :  { %v1307_v9 = vpop.permute.xlu1 %1306  ;;  %v1293_v18 = vpop.permute.xlu0 %1292 }
 0xa7b   :  { %1745 = vmatmul.mubr.msk.f32.gmra.mrb[14].mxu1 %vm69_vm0, %v1174_v61  ;;  %v1338_v29 = vsel %vm1336_vm3, %v1333_v14, %v1307_v9  ;;  %v1334_v28 = vsel %vm179_vm1, %v2341_v49, %v1293_v18  ;;  %v1346_v49 = vlaneseq }
 0xa7c   :  { %1856 = vmatpush3.bf16.msra.mxu1 %v1853_v58 }
 0xa7d   :  { %v1347_v36 = vshrl.u32 %v1346_v49, 7 }
 0xa7e   :  { %v1295_v17 = vpop.permute.xlu1 %1294  ;;  %v1309_v21 = vpop.permute.xlu0 %1308 }
 0xa7f   :  { %v1335_v46 = vsel %vm179_vm1, %v2339_v48, %v1295_v17  ;;  %v1339_v33 = vsel %vm1336_vm3, %v1334_v28, %v1309_v21  ;;  %v1348_v37 = vsub.s32 0, %v1347_v36 }
 0xa81   :  { %v1349_v39 = vrot.slane %v64_v38, %v1348_v37 }
 0xa82   :  { %v1311_v19 = vpop.permute.xlu1 %1310 }
 0xa83   :  { %v1340_v26 = vsel %vm1336_vm3, %v1335_v46, %v1311_v19 }
 0xb4a   :  { %v1743_v62 = vpop.f32.mrb[12].mxu1 }
 0xb4b   :  { %1322 = vrot.lane.b32.xlu1 %v1743_v62, %s2143_s8  ;;  %v1265_v63 = vpop.f32.mrb[13].mxu1 }
 0xb4c   :  { %1320 = vrot.lane.b32.xlu0 %v1265_v63, %s2143_s8 }
 0xb4e   :  { %v1746_v4 = vpop.f32.mrb[14].mxu1 }
 0xb4f   :  { %1326 = vrot.lane.b32.xlu1 %v1746_v4, %s2143_s8  ;;  %v1275_v6 = vpop.f32.mrb[15].mxu1 }
 0xb50   :  { %1324 = vrot.lane.b32.xlu0 %v1275_v6, %s2143_s8 }
 0xbbd   :  { %v1323_v27 = vpop.permute.xlu1 %1322 }
 0xbbe   :  { %v1321_v15 = vpop.permute.xlu0 %1320  ;;  %v1343_v32 = vsel %vm1341_vm4, %v1338_v29, %v1323_v27 }
 0xbbf   :  { %v1342_v30 = vsel %vm1341_vm4, %v1337_v12, %v1321_v15 }
 0xbc0   :  { %1755 = vmatprep.mubr.msk.f32.mxu1 %vm69_vm0, %v1342_v30 }
 0xbc1   :  { %1756 = vmatmul.mubr.msk.f32.vlgmr.msra.gmra.mrb[16].mxu1 %vm69_vm0, %v1343_v32  ;;  %v1327_v47 = vpop.permute.xlu1 %1326 }
 0xbc2   :  { %v1325_v34 = vpop.permute.xlu0 %1324  ;;  %v1345_v35 = vsel %vm1341_vm4, %v1340_v26, %v1327_v47 }
 0xbc3   :  { %v1344_v31 = vsel %vm1341_vm4, %v1339_v33, %v1325_v34 }
 0xbc4   :  { %1758 = vmatprep.mubr.msk.f32.mxu1 %vm69_vm0, %v1344_v31 }
 0xbc5   :  { %1759 = vmatmul.mubr.msk.f32.gmra.mrb[18].mxu1 %vm69_vm0, %v1345_v35 }
 0xc94   :  { %v1757_v40 = vpop.f32.mrb[16].mxu1 }
 0xc95   :  { %v1450_v48 = vadd.f32 %v1757_v40, %v1349_v39  ;;  %v1444_v41 = vpop.f32.mrb[17].mxu1 }
 0xc96   :  { %v1445_v0 = vadd.f32 %v1444_v41, %v1349_v39 }
 0xc97   :  { %1464 = vst.msk [vmem:[#allocation8 + $0x8] sm:$0xff] %vm69_vm0, %v1450_v48 }
 0xc98   :  { %1463 = vst.msk [vmem:[#allocation8] sm:$0xff] %vm69_vm0, %v1445_v0  ;;  %v1760_v1 = vpop.f32.mrb[18].mxu1 }
 0xc99   :  { %v1460_v2 = vadd.f32 %v1760_v1, %v1349_v39  ;;  %v1454_v3 = vpop.f32.mrb[19].mxu1 }
 0xc9a   :  { %v1455_v5 = vadd.f32 %v1454_v3, %v1349_v39 }
 0xc9b   :  { %1466 = vst.msk [vmem:[#allocation8 + $0x18] sm:$0xff] %vm69_vm0, %v1460_v2 }
 0xc9c   :  { %1465 = vst.msk [vmem:[#allocation8 + $0x10] sm:$0xff] %vm69_vm0, %v1455_v5 }
 0xc9d   :  { %2108 = shalt.err (!%p2105_p0)
}
 0xc9e   :  { %s2109_s13 = scalar_lea.hbm %s2502_s3, 512 }
 0xc9f   :  { %p2110_p1 = scmp.ne.s32.totalorder %s2502_s3, %s2109_s13  ;;  %p2113_p2 = scmp.lt.u32.totalorder %s2109_s13, %s2502_s3 }
 0xca1   :  { %p2115_p3 = pnand %p2113_p2, %p2110_p1 }
 0xca3   :  { %2118 = shalt.err (!%p2115_p3)
}
 0xca4   :  { %1478 = dma.vmem_to_hbm [thread:$0]  %s1473_s9, 512, %s2502_s3, [#allocation4], %s2127_s24, %s2127_s24, %s2128_s25  }
 0xca5   :  { %2123 = dma.done.wait [#allocation4], 512  }
 0xca6   :  { %2124 = vsyncadd [#allocation4], 4294966784 }
 0xca7   :  { %1482 = vsyncpa [#allocation3], 1 }
 0xca8   :  { %1483 = vsyncpa [#allocation6], 1 }
 0xca9   :  { %1484 = vsyncpa [#allocation4], 1 }

</bundles_post_ra>
